<compile_context>
chip_gen: v7x
topology: tpu7x:2x2x1
jax: 0.10.0
libtpu: 0.0.40
codegen_flags: <defaults>
</compile_context>

<pallas_src>
import functools

import jax
import jax.numpy as jnp
from jax.experimental import pallas as pl
from jax.experimental.pallas import tpu as pltpu


# Total double-buffered streaming VMEM budget per grid step (all chip generations),
# and the explicit scoped-VMEM limit (kept well under v7x's 64 MiB physical VMEM,
# and above v5e's 16 MiB / v6e's 32 MiB defaults so the budget actually applies).
_TOTAL_VMEM_BUDGET = 24 * 1024 * 1024
_VMEM_LIMIT_BYTES = 40 * 1024 * 1024


def _make_basenorm_kernel(reverse: bool):
    def kernel(x1_ref, x2_ref, m_ref, s_ref, o1_ref, o2_ref):
        # Param rows: row 0 -> first half (x1), row 1 -> second half (x2).
        m1 = m_ref[0:1, :]
        m2 = m_ref[1:2, :]
        s1 = s_ref[0:1, :]
        s2 = s_ref[1:2, :]
        if reverse:
            # x = x / inv_std + mean  (reciprocal on the tiny param rows, then FMA).
            o1_ref[...] = x1_ref[...] * (1.0 / s1) + m1
            o2_ref[...] = x2_ref[...] * (1.0 / s2) + m2
        else:
            # x = (x - mean) * inv_std
            o1_ref[...] = (x1_ref[...] - m1) * s1
            o2_ref[...] = (x2_ref[...] - m2) * s2

    return kernel


def _pick_col_tile(k: int, max_cols: int) -> int:
    """Column tile: multiple of 128 (or full K), <= max_cols, preferring divisors of K."""
    if k <= 128 or max_cols >= k:
        return k
    max_cols = max(128, (max_cols // 128) * 128)
    if k % 128 == 0:
        t = max_cols
        while t >= 128:
            if k % t == 0:          # largest multiple-of-128 divisor -> no masked tail
                return t
            t -= 128
        return 128
    # K not a multiple of 128: use a multiple-of-128 tile; trailing block is masked.
    return max_cols


@functools.partial(jax.jit, static_argnames=("reverse",))
def base_norm_forward(x_tuple, ldj, mean, inv_std, reverse=False):
    """Pallas implementation of _BaseNorm.forward.

    Args:
      x_tuple: tuple (x1, x2), each (N, C, H, W) float32.
      ldj:     (N,) float32 log-det-jacobian accumulator.
      mean, inv_std: (1, 2C, H, W) float32 parameters.
      reverse: static bool.

    Returns:
      ((y1, y2), ldj_out) matching the PyTorch module.
    """
    x1, x2 = x_tuple
    n, c, h, w = x1.shape
    c2 = 2 * c
    assert x2.shape == (n, c, h, w)
    assert mean.shape == (1, c2, h, w) and inv_std.shape == (1, c2, h, w)

    k = c * h * w
    itemsize = jnp.dtype(x1.dtype).itemsize

    # ---- lane-dense 2D views (row-major contiguous -> reshapes are free) ------------
    x1f = x1.reshape(n, k)
    x2f = x2.reshape(n, k)
    mean2d = mean.reshape(2, k).astype(x1.dtype)      # row 0: first C chans, row 1: rest
    inv2d = inv_std.reshape(2, k).astype(x1.dtype)

    # Parameter-only ldj term, hoisted out of the kernel entirely.
    logsum = jnp.sum(jnp.log(inv2d))
    ldj_out = ldj - logsum if reverse else ldj + logsum

    # ---- tiling: budget TOTAL per-step VMEM (2 in + 2 out streams, double-buffered,
    # plus 2 param streams padded to 8 sublanes -> ~10 stream-equivalents) -------------
    tn = n if n <= 256 else 256                       # full dim (legal) or multiple of 8
    per_stream = _TOTAL_VMEM_BUDGET // 10
    max_cols = max(128, per_stream // max(1, tn * itemsize))
    tk = _pick_col_tile(k, max_cols)

    grid_n = pl.cdiv(n, tn)
    grid_k = pl.cdiv(k, tk)
    # v7x megacore: make sure there are >= 2 grid steps when cheaply possible.
    if grid_n * grid_k == 1 and k >= 256 and k % 256 == 0:
        tk = _pick_col_tile(k, k // 2)
        grid_k = pl.cdiv(k, tk)
    grid = (grid_n, grid_k)

    x_spec = pl.BlockSpec((tn, tk), lambda i, j: (i, j))
    p_spec = pl.BlockSpec((2, tk), lambda i, j: (0, j))

    kernel = _make_basenorm_kernel(reverse)

    cost = pl.CostEstimate(
        flops=4 * n * k,                              # ~2 flops/elem over both halves
        transcendentals=0,
        bytes_accessed=4 * n * k * itemsize + 2 * 2 * k * itemsize,
    )

    y1f, y2f = pl.pallas_call(
        kernel,
        out_shape=(
            jax.ShapeDtypeStruct((n, k), x1.dtype),
            jax.ShapeDtypeStruct((n, k), x2.dtype),
        ),
        grid=grid,
        in_specs=[x_spec, x_spec, p_spec, p_spec],
        out_specs=(x_spec, x_spec),
        compiler_params=pltpu.CompilerParams(
            dimension_semantics=("parallel", "parallel"),
            vmem_limit_bytes=_VMEM_LIMIT_BYTES,
        ),
        cost_estimate=cost,
    )(x1f, x2f, mean2d, inv2d)

    y1 = y1f.reshape(n, c, h, w)
    y2 = y2f.reshape(n, c, h, w)
    return (y1, y2), ldj_out


if __name__ == "__main__":
    key = jax.random.PRNGKey(0)
    k1, k2, k3, k4 = jax.random.split(key, 4)

    N, C, H, W = 2, 4, 16, 16                         # module built with num_channels=C -> params use 2C
    x1 = jax.random.normal(k1, (N, C, H, W), jnp.float32)
    x2 = jax.random.normal(k2, (N, C, H, W), jnp.float32)
    ldj = jnp.zeros((N,), jnp.float32)

    # Deterministic "already initialized" parameters (shapes from __init__: (1, 2C, H, W)).
    mean = 0.1 * jax.random.normal(k3, (1, 2 * C, H, W), jnp.float32)
    inv_std = jnp.exp(0.1 * jax.random.normal(k4, (1, 2 * C, H, W), jnp.float32))

    # Forward
    (y1, y2), ldj_out = base_norm_forward((x1, x2), ldj, mean, inv_std, reverse=False)
    jax.block_until_ready((y1, y2, ldj_out))

    # Reference (plain JAX, same semantics as the PyTorch module).
    x_cat = jnp.concatenate([x1, x2], axis=1)
    ref = (x_cat - mean) * inv_std
    r1, r2 = jnp.split(ref, 2, axis=1)
    ref_ldj = ldj + jnp.sum(jnp.log(inv_std))
    assert jnp.allclose(y1, r1, atol=1e-5, rtol=1e-5)
    assert jnp.allclose(y2, r2, atol=1e-5, rtol=1e-5)
    assert jnp.allclose(ldj_out, ref_ldj, atol=1e-4, rtol=1e-5)

    # Reverse round-trip
    (z1, z2), ldj_back = base_norm_forward((y1, y2), ldj_out, mean, inv_std, reverse=True)
    jax.block_until_ready((z1, z2, ldj_back))
    assert jnp.allclose(z1, x1, atol=1e-4, rtol=1e-4)
    assert jnp.allclose(z2, x2, atol=1e-4, rtol=1e-4)
    assert jnp.allclose(ldj_back, ldj, atol=1e-4, rtol=1e-4)

    print("KERNEL_OK")
</pallas_src>

<mosaic_0001>
module attributes {stable_mosaic.version = 11 : i64} {
  func.func @kernel(%arg0: i32, %arg1: i32, %arg2: memref<2x512xf32, #tpu.memory_space<vmem>>, %arg3: memref<2x512xf32, #tpu.memory_space<vmem>>, %arg4: memref<2x512xf32, #tpu.memory_space<vmem>>, %arg5: memref<2x512xf32, #tpu.memory_space<vmem>>, %arg6: memref<2x512xf32, #tpu.memory_space<vmem>>, %arg7: memref<2x512xf32, #tpu.memory_space<vmem>>) attributes {dimension_semantics = [#tpu.dimension_semantics<parallel>, #tpu.dimension_semantics<parallel>], iteration_bounds = array<i64: 1, 2>, scalar_prefetch = 0 : i64, scratch_operands = 0 : i64, tpu.core_type = #tpu.core_type<tc>, window_params = [{transform_indices = @transform_0, window_bounds = array<i64: 2, 512>}, {transform_indices = @transform_1, window_bounds = array<i64: 2, 512>}, {transform_indices = @transform_2, window_bounds = array<i64: 2, 512>}, {transform_indices = @transform_3, window_bounds = array<i64: 2, 512>}, {transform_indices = @transform_4, window_bounds = array<i64: 2, 512>}, {transform_indices = @transform_5, window_bounds = array<i64: 2, 512>}]} {
    %c0 = arith.constant 0 : index
    %c0_0 = arith.constant 0 : index
    %0 = vector.load %arg4[%c0, %c0_0] : memref<2x512xf32, #tpu.memory_space<vmem>>, vector<1x512xf32>
    %c1 = arith.constant 1 : index
    %c0_1 = arith.constant 0 : index
    %1 = vector.load %arg4[%c1, %c0_1] : memref<2x512xf32, #tpu.memory_space<vmem>>, vector<1x512xf32>
    %c0_2 = arith.constant 0 : index
    %c0_3 = arith.constant 0 : index
    %2 = vector.load %arg5[%c0_2, %c0_3] : memref<2x512xf32, #tpu.memory_space<vmem>>, vector<1x512xf32>
    %c1_4 = arith.constant 1 : index
    %c0_5 = arith.constant 0 : index
    %3 = vector.load %arg5[%c1_4, %c0_5] : memref<2x512xf32, #tpu.memory_space<vmem>>, vector<1x512xf32>
    %c0_6 = arith.constant 0 : index
    %c0_7 = arith.constant 0 : index
    %4 = vector.load %arg2[%c0_6, %c0_7] : memref<2x512xf32, #tpu.memory_space<vmem>>, vector<2x512xf32>
    %5 = vector.broadcast %0 : vector<1x512xf32> to vector<2x512xf32>
    %6 = arith.subf %4, %5 : vector<2x512xf32>
    %7 = vector.broadcast %2 : vector<1x512xf32> to vector<2x512xf32>
    %8 = arith.mulf %6, %7 : vector<2x512xf32>
    %c0_8 = arith.constant 0 : index
    %c0_9 = arith.constant 0 : index
    %9 = vector.load %arg6[%c0_8, %c0_9] : memref<2x512xf32, #tpu.memory_space<vmem>>, vector<2x512xf32>
    tpu.vector_store %arg6[%c0_8, %c0_9], %8 {strides = array<i32>} : memref<2x512xf32, #tpu.memory_space<vmem>>, vector<2x512xf32>,
    %c0_10 = arith.constant 0 : index
    %c0_11 = arith.constant 0 : index
    %10 = vector.load %arg3[%c0_10, %c0_11] : memref<2x512xf32, #tpu.memory_space<vmem>>, vector<2x512xf32>
    %11 = vector.broadcast %1 : vector<1x512xf32> to vector<2x512xf32>
    %12 = arith.subf %10, %11 : vector<2x512xf32>
    %13 = vector.broadcast %3 : vector<1x512xf32> to vector<2x512xf32>
    %14 = arith.mulf %12, %13 : vector<2x512xf32>
    %c0_12 = arith.constant 0 : index
    %c0_13 = arith.constant 0 : index
    %15 = vector.load %arg7[%c0_12, %c0_13] : memref<2x512xf32, #tpu.memory_space<vmem>>, vector<2x512xf32>
    tpu.vector_store %arg7[%c0_12, %c0_13], %14 {strides = array<i32>} : memref<2x512xf32, #tpu.memory_space<vmem>>, vector<2x512xf32>,
    return
  }
  func.func @transform_0(%arg0: i32, %arg1: i32) -> (i32, i32) {
    %c0_i32 = arith.constant 0 : i32
    return %arg0, %arg1 : i32, i32
  }
  func.func @transform_1(%arg0: i32, %arg1: i32) -> (i32, i32) {
    %c0_i32 = arith.constant 0 : i32
    return %arg0, %arg1 : i32, i32
  }
  func.func @transform_2(%arg0: i32, %arg1: i32) -> (i32, i32) {
    %c0_i32 = arith.constant 0 : i32
    %c0_i32_0 = arith.constant 0 : i32
    return %c0_i32, %arg1 : i32, i32
  }
  func.func @transform_3(%arg0: i32, %arg1: i32) -> (i32, i32) {
    %c0_i32 = arith.constant 0 : i32
    %c0_i32_0 = arith.constant 0 : i32
    return %c0_i32, %arg1 : i32, i32
  }
  func.func @transform_4(%arg0: i32, %arg1: i32) -> (i32, i32) {
    %c0_i32 = arith.constant 0 : i32
    return %arg0, %arg1 : i32, i32
  }
  func.func @transform_5(%arg0: i32, %arg1: i32) -> (i32, i32) {
    %c0_i32 = arith.constant 0 : i32
    return %arg0, %arg1 : i32, i32
  }
}

</mosaic_0001>

<bundles_post_ra>
// kernel: base_norm_forward.1
= control target key start
LH: loop header
LB: loop body
LE: loop exit
PB: predicated region body
PF: predicated region fallthrough
CT: control target
= control target key end

     0   :  { %s802_s18 = smov 0   ;;  %s804_s19 = smov 0   ;;  %s855_s0 = inlined_call_operand.vmem [shape: f32[2,1024], index: 0, kind: input, shape index: {}]   ;;  %s856_s1 = inlined_call_operand.vmem [shape: f32[2,1024], index: 1, kind: input, shape index: {}]   ;;  %s857_s2 = inlined_call_operand.vmem [shape: f32[2,1024], index: 2, kind: input, shape index: {}]   ;;  %s858_s3 = inlined_call_operand.vmem [shape: f32[2,1024], index: 3, kind: input, shape index: {}]   ;;  %s859_s4 = inlined_call_operand.vmem [shape: f32[2,1024], index: 4, kind: output, shape index: {0}]   ;;  %s860_s5 = inlined_call_operand.vmem [shape: f32[2,1024], index: 5, kind: output, shape index: {1}]  }
   0x1   :  { %s806_s20 = smov 0  }
   0x2 LB: > { %s25_s21 = sadd.s32 1, %s765_s19  ;;  %p705_p0 = scmp.ge.s32.totalorder %s769_s20, 1  ;;  %s769_s20 = sphi %s806_s20, %s16_s20   ;;  %s765_s19 = sphi %s804_s19, %s862_s19   ;;  %s761_s18 = sphi %s802_s18, %s861_s18  }
   0x3   : > { %p26_p1 = scmp.ge.s32.totalorder %s25_s21, 2  ;;  %p252_p2 = scmp.lt.s32.totalorder %s769_s20, 3 }
   0x5   : > { %s864_s21 = smov (%p26_p1, %s25_s21), 0  ;;  %p253_p3 = pnand %p705_p0, %p252_p2 }
   0x6   : > { %s706_s22 = sshll.u32 (!%p253_p3), %s761_s18, 2  ;;  %v376_v0 = vlaneseq (!%p253_p3)  ;;  %v771_v1 = vmov (!%p253_p3), 1983009808  }
   0x7   : > { %256 = sbr.rel (%p253_p3) target bundleno = 35 (0x23), region = 36  ;;  %p319_p4 = scmp.lt.s32.totalorder (!%p253_p3), %s706_s22, 7  ;;  %v395_v2 = vunpack.c.l.s4 (!%p253_p3), %v771_v1 }
   0x8   : > { %v377_v3 = vshrl.u32 (!%p253_p3), %v376_v0, 7 }
   0x9   : > { %v396_v4 = vunpack.c.0.s8 (!%p253_p3), %v395_v2 }
   0xa   : > { %v378_v5 = vsub.s32 (!%p253_p3), 0, %v377_v3  ;;  %v382_v6 = vsub.s32 (!%p253_p3), 1, %v377_v3  ;;  %v386_v7 = vsub.s32 (!%p253_p3), 2, %v377_v3  ;;  %v390_v8 = vsub.s32 (!%p253_p3), 3, %v377_v3 }
   0xb   : > { %v399_v10 = vsub.s32 (!%p253_p3), %v396_v4, %v377_v3 }
   0xe   : > { %s866_s22 = smov (!%p319_p4, %s706_s22), 7 }
   0xf   : > { %s820_s23 = sshll.u32 %s866_s22, 1 }
  0x10   : > { %s340_s26 = scalar_lea.vmem %s857_s2, %s820_s23  ;;  %s346_s29 = scalar_lea.vmem %s858_s3, %s820_s23 }
  0x11   : > { %v368_v9 = vld [vmem:[%s340_s26] ss:$2 sm:$0xf]  ;;  %v718_v16 = vld [vmem:[%s340_s26 + $0x1] ss:$2 sm:$0xf]  ;;  %s324_s7 = scalar_lea.vmem %s855_s0, %s820_s23  ;;  %s334_s10 = scalar_lea.vmem %s856_s1, %s820_s23 }
  0x12   : > { %v371_v11 = vld [vmem:[%s346_s29] ss:$2 sm:$0xf]  ;;  %v379_v12 = vrot.slane %v368_v9, %v378_v5  ;;  %v383_v13 = vrot.slane %v368_v9, %v382_v6  ;;  %v387_v14 = vrot.slane %v368_v9, %v386_v7  ;;  %v391_v15 = vrot.slane %v368_v9, %v390_v8  ;;  %v719_v21 = vld [vmem:[%s346_s29 + $0x1] ss:$2 sm:$0xf]  ;;  %s356_s13 = scalar_lea.vmem %s859_s4, %s820_s23  ;;  %s366_s16 = scalar_lea.vmem %s860_s5, %s820_s23 }
  0x13   : > { %v415_v17 = vrot.slane %v371_v11, %v378_v5  ;;  %v419_v18 = vrot.slane %v371_v11, %v382_v6  ;;  %v423_v19 = vrot.slane %v371_v11, %v386_v7  ;;  %v427_v20 = vrot.slane %v371_v11, %v390_v8  ;;  %v374_v34 = vld [vmem:[%s324_s7] sm:$0xff] }
  0x14   : > { %v392_v22 = vcombine.low %v379_v12, %v383_v13  ;;  %v393_v23 = vcombine.low %v387_v14, %v391_v15  ;;  %v453_v24 = vrot.slane %v718_v16, %v378_v5  ;;  %v457_v25 = vrot.slane %v718_v16, %v382_v6  ;;  %v448_v47 = vld [vmem:[%s334_s10] sm:$0xff] }
  0x15   : > { %v428_v26 = vcombine.low %v415_v17, %v419_v18  ;;  %v429_v27 = vcombine.low %v423_v19, %v427_v20  ;;  %v461_v28 = vrot.slane %v718_v16, %v386_v7  ;;  %v465_v29 = vrot.slane %v718_v16, %v390_v8 }
  0x16   : > { %v400_v30 = vrot.slane %v392_v22, %v399_v10  ;;  %v407_v31 = vrot.slane %v393_v23, %v399_v10  ;;  %v466_v32 = vcombine.low %v453_v24, %v457_v25  ;;  %v489_v33 = vrot.slane %v719_v21, %v378_v5 }
  0x17   : > { %v436_v35 = vrot.slane %v428_v26, %v399_v10  ;;  %v443_v36 = vrot.slane %v429_v27, %v399_v10  ;;  %v467_v37 = vcombine.low %v461_v28, %v465_v29  ;;  %v493_v38 = vrot.slane %v719_v21, %v382_v6 }
  0x18   : > { %v408_v39 = vcombine.low %v400_v30, %v407_v31  ;;  %v474_v40 = vrot.slane %v466_v32, %v399_v10  ;;  %v497_v41 = vrot.slane %v719_v21, %v386_v7  ;;  %v501_v42 = vrot.slane %v719_v21, %v390_v8 }
  0x19   : > { %v444_v43 = vcombine.low %v436_v35, %v443_v36  ;;  %v481_v44 = vrot.slane %v467_v37, %v399_v10  ;;  %v502_v45 = vcombine.low %v489_v33, %v493_v38 }
  0x1a   : > { %v410_v46 = vsub.f32 %v374_v34, %v408_v39  ;;  %v503_v48 = vcombine.low %v497_v41, %v501_v42 }
  0x1b   : > { %v482_v49 = vcombine.low %v474_v40, %v481_v44  ;;  %v510_v50 = vrot.slane %v502_v45, %v399_v10 }
  0x1c   : > { %v446_v51 = vmul.f32 %v444_v43, %v410_v46  ;;  %v517_v52 = vrot.slane %v503_v48, %v399_v10 }
  0x1d   : > { %v484_v53 = vsub.f32 %v448_v47, %v482_v49 }
  0x1e   : > { %447 = vst [vmem:[%s356_s13] sm:$0xff] %v446_v51  ;;  %v518_v54 = vcombine.low %v510_v50, %v517_v52 }
  0x20   : > { %v520_v55 = vmul.f32 %v518_v54, %v484_v53 }
  0x22   : > { %521 = vst [vmem:[%s366_s16] sm:$0xff] %v520_v55 }
  0x23 PF: > { %s16_s20 = sadd.s32 1, %s769_s20   ;;  %s861_s18 = smov %s765_s19 }
  0x24   : > { %p13_p5 = scmp.ge.s32.totalorder %s16_s20, 4   ;;  %s862_s19 = smov %s864_s21 }
  0x26   :  { %15 = sbr.rel (!%p13_p5) target bundleno = 2 (0x2), region = 89 }

</bundles_post_ra>
